<compile_context>
chip_gen: v7x
topology: tpu7x:2x2x1
jax: 0.10.0
libtpu: 0.0.40
codegen_flags: <defaults>
</compile_context>

<pallas_src>
import functools
import math

import jax
import jax.numpy as jnp
from jax.experimental import pallas as pl
from jax.experimental.pallas import tpu as pltpu

DEFAULT_PROJECTION_DIM = 128
_LANE = 128      # lane width: last dim padded to multiples of this
_SUBLANE = 16    # bf16 packs 16 sublane rows per vreg -> batch tile granularity


def _round_up(x, m):
    return ((x + m - 1) // m) * m


def _cdiv(a, b):
    return -(-a // b)


def _projection_head_kernel(x_ref, w1_ref, b1_ref, w2_ref, b2_ref, o_ref):
    # x arrives as f32; cast to bf16 on the VPU (hides under DMA / MXU) so the
    # wrapper never materializes a padded bf16 copy of x in HBM.
    x = x_ref[...].astype(jnp.bfloat16)
    # fc1: [tile_n, d_in_p] @ [d_in_p, h_p] on the MXU, f32 accumulation.
    h = jnp.dot(x, w1_ref[...], preferred_element_type=jnp.float32)
    h = jnp.maximum(h + b1_ref[...], 0.0)   # bias + ReLU in f32 (v5e VPU has no bf16)
    # TODO(synk): dropout is identity here (eval mode); training-mode dropout
    # would need pltpu.prng_seed / pltpu.prng_random_bits.
    # fc2: [tile_n, h_p] @ [h_p, d_out_p]; cast activations to bf16 for the MXU.
    out = jnp.dot(h.astype(jnp.bfloat16), w2_ref[...],
                  preferred_element_type=jnp.float32)
    o_ref[...] = (out + b2_ref[...]).astype(o_ref.dtype)


def prepare_params(w1, b1, w2, b2):
    """Pad feature dims to 128 multiples and cast ONCE (call at init time).

    Zero padding is mathematically exact: padded x columns hit zero w1 rows;
    padded hidden units have zero bias and zero w2 rows, so ReLU(0)=0
    contributes nothing to fc2.
    Returns ((w1_p, b1_p, w2_p, b2_p), d_out).
    """
    d_in, h_dim = w1.shape
    d_out = w2.shape[1]
    d_in_p = _round_up(d_in, _LANE)
    h_p = _round_up(h_dim, _LANE)
    d_out_p = _round_up(d_out, _LANE)
    w1_p = jnp.pad(jnp.asarray(w1),
                   ((0, d_in_p - d_in), (0, h_p - h_dim))).astype(jnp.bfloat16)
    b1_p = jnp.pad(jnp.asarray(b1).reshape(1, -1),
                   ((0, 0), (0, h_p - h_dim))).astype(jnp.float32)
    w2_p = jnp.pad(jnp.asarray(w2),
                   ((0, h_p - h_dim), (0, d_out_p - d_out))).astype(jnp.bfloat16)
    b2_p = jnp.pad(jnp.asarray(b2).reshape(1, -1),
                   ((0, 0), (0, d_out_p - d_out))).astype(jnp.float32)
    return (w1_p, b1_p, w2_p, b2_p), d_out


@functools.partial(jax.jit, static_argnames=("d_out", "out_dtype", "target_tile_n"))
def projection_head(x, w1_p, b1_p, w2_p, b2_p, *, d_out,
                    out_dtype=jnp.float32, target_tile_n=256):
    """x: [N, D_in] float32; padded params from prepare_params. Returns [N, d_out]."""
    n, d_in = x.shape
    d_in_p, h_p = w1_p.shape
    d_out_p = w2_p.shape[1]

    # Adaptive batch tiling: minimize padding waste on ragged batch sizes while
    # keeping tiles large enough to amortize the ~0.35 us per-grid-step overhead.
    num_tiles = max(1, _cdiv(n, target_tile_n))
    tile_n = _round_up(_cdiv(n, num_tiles), _SUBLANE)
    n_p = tile_n * num_tiles

    # x stays f32 (cast happens in-kernel); pad only when strictly needed.
    x = x.astype(jnp.float32)
    if n_p != n or d_in_p != d_in:
        x = jnp.pad(x, ((0, n_p - n), (0, d_in_p - d_in)))

    out_itemsize = jnp.dtype(out_dtype).itemsize
    # VMEM footprint: single-buffered resident weights/biases, double-buffered
    # streaming x / out tiles, plus the f32 hidden slab inside the kernel.
    weight_bytes = (w1_p.size + w2_p.size) * 2 + (b1_p.size + b2_p.size) * 4
    stream_bytes = 2 * tile_n * d_in_p * 4 + 2 * tile_n * d_out_p * out_itemsize
    hidden_bytes = tile_n * h_p * 4
    footprint = weight_bytes + stream_bytes + hidden_bytes
    vmem_limit = int(min(96 * 1024 * 1024, max(2 * footprint, 16 * 1024 * 1024)))
    # TODO(synk): if resident weights alone exceed ~40 MiB (v7x has 64 MiB VMEM),
    # switch to a hidden-dim-tiled inner loop instead of full weight residency.

    flops = 2 * n_p * (d_in_p * h_p + h_p * d_out_p)
    bytes_accessed = x.size * 4 + weight_bytes + n_p * d_out_p * out_itemsize
    cost = pl.CostEstimate(flops=flops, transcendentals=0,
                           bytes_accessed=bytes_accessed)

    resident = pl.Buffered(1)  # constant index_map -> no double-buffering needed

    out_p = pl.pallas_call(
        _projection_head_kernel,
        out_shape=jax.ShapeDtypeStruct((n_p, d_out_p), out_dtype),
        grid_spec=pltpu.PrefetchScalarGridSpec(
            num_scalar_prefetch=0,
            grid=(num_tiles,),
            in_specs=[
                # activations stream per grid step (double-buffered by Pallas)
                pl.BlockSpec((tile_n, d_in_p), lambda i: (i, 0)),
                # weights / biases stay resident in VMEM, single-buffered
                pl.BlockSpec((d_in_p, h_p), lambda i: (0, 0),
                             pipeline_mode=resident),
                pl.BlockSpec((1, h_p), lambda i: (0, 0),
                             pipeline_mode=resident),
                pl.BlockSpec((h_p, d_out_p), lambda i: (0, 0),
                             pipeline_mode=resident),
                pl.BlockSpec((1, d_out_p), lambda i: (0, 0),
                             pipeline_mode=resident),
            ],
            out_specs=pl.BlockSpec((tile_n, d_out_p), lambda i: (i, 0)),
        ),
        compiler_params=pltpu.CompilerParams(
            dimension_semantics=("parallel",),   # batch axis: megacore-shardable
            vmem_limit_bytes=vmem_limit,
        ),
        cost_estimate=cost,
    )(x, w1_p, b1_p, w2_p, b2_p)

    return out_p[:n, :d_out]


def init_params(key, input_dim, hidden_dim, output_dim=DEFAULT_PROJECTION_DIM,
                dtype=jnp.float32):
    """Init matching nn.Linear's U(-1/sqrt(fan_in), 1/sqrt(fan_in)).

    Weights are returned already transposed to [in, out] layout.
    """
    k1, k2, k3, k4 = jax.random.split(key, 4)
    bound1 = 1.0 / math.sqrt(input_dim)
    bound2 = 1.0 / math.sqrt(hidden_dim)
    w1 = jax.random.uniform(k1, (input_dim, hidden_dim), dtype, -bound1, bound1)
    b1 = jax.random.uniform(k2, (hidden_dim,), dtype, -bound1, bound1)
    w2 = jax.random.uniform(k3, (hidden_dim, output_dim), dtype, -bound2, bound2)
    b2 = jax.random.uniform(k4, (output_dim,), dtype, -bound2, bound2)
    return w1, b1, w2, b2


def reference_f32(x, w1, b1, w2, b2):
    """Pure-JAX float32 reference (dropout in eval mode = identity)."""
    h = jnp.maximum(x @ w1 + b1.reshape(1, -1), 0.0)
    return h @ w2 + b2.reshape(1, -1)


if __name__ == "__main__":
    key = jax.random.PRNGKey(0)
    kx1, kp1, kx2, kp2 = jax.random.split(key, 4)

    # Case 1: small shapes consistent with the module (features padded to 128
    # internally at param-prep time).
    n1, d_in1, h1 = 8, 32, 64
    x1 = jax.random.normal(kx1, (n1, d_in1), jnp.float32)
    p1 = init_params(kp1, d_in1, h1)
    packed1, d_out1 = prepare_params(*p1)

    out1 = jax.block_until_ready(projection_head(x1, *packed1, d_out=d_out1))
    ref1 = reference_f32(x1, *p1)
    assert out1.shape == (n1, DEFAULT_PROJECTION_DIM), out1.shape
    assert out1.dtype == jnp.float32
    assert jnp.allclose(out1, ref1, atol=5e-2, rtol=5e-2), \
        "case 1 mismatch vs f32 reference"

    # Case 2: ragged batch -> exercises adaptive tiling (300 -> 2 tiles of 160),
    # padding, and output slicing.
    n2, d_in2, h2 = 300, 96, 160
    x2 = jax.random.normal(kx2, (n2, d_in2), jnp.float32)
    p2 = init_params(kp2, d_in2, h2)
    packed2, d_out2 = prepare_params(*p2)

    out2 = jax.block_until_ready(projection_head(x2, *packed2, d_out=d_out2))
    ref2 = reference_f32(x2, *p2)
    assert out2.shape == (n2, DEFAULT_PROJECTION_DIM), out2.shape
    assert jnp.allclose(out2, ref2, atol=8e-2, rtol=8e-2), \
        "case 2 mismatch vs f32 reference"

    # Optional bf16 output path (halves writeback traffic).
    out2_bf16 = jax.block_until_ready(
        projection_head(x2, *packed2, d_out=d_out2, out_dtype=jnp.bfloat16))
    assert out2_bf16.dtype == jnp.bfloat16
    assert jnp.allclose(out2_bf16.astype(jnp.float32), ref2, atol=2e-1, rtol=2e-1), \
        "case 2 (bf16 out) mismatch vs f32 reference"

    print("KERNEL_OK")
</pallas_src>

<mosaic_0001>
module attributes {stable_mosaic.version = 11 : i64} {
  func.func @_projection_head_kernel(%arg0: i32, %arg1: memref<16x128xf32, #tpu.memory_space<vmem>>, %arg2: memref<128x128xbf16, #tpu.memory_space<vmem>>, %arg3: memref<1x128xf32, #tpu.memory_space<vmem>>, %arg4: memref<128x128xbf16, #tpu.memory_space<vmem>>, %arg5: memref<1x128xf32, #tpu.memory_space<vmem>>, %arg6: memref<16x128xf32, #tpu.memory_space<vmem>>) attributes {dimension_semantics = [#tpu.dimension_semantics<parallel>], iteration_bounds = array<i64: 1>, scalar_prefetch = 0 : i64, scratch_operands = 0 : i64, tpu.core_type = #tpu.core_type<tc>, window_params = [{transform_indices = @transform_0, window_bounds = array<i64: 16, 128>}, {pipeline_mode = #tpu.pipeline_mode<synchronous>, transform_indices = @transform_1, window_bounds = array<i64: 128, 128>}, {pipeline_mode = #tpu.pipeline_mode<synchronous>, transform_indices = @transform_2, window_bounds = array<i64: 1, 128>}, {pipeline_mode = #tpu.pipeline_mode<synchronous>, transform_indices = @transform_3, window_bounds = array<i64: 128, 128>}, {pipeline_mode = #tpu.pipeline_mode<synchronous>, transform_indices = @transform_4, window_bounds = array<i64: 1, 128>}, {transform_indices = @transform_5, window_bounds = array<i64: 16, 128>}]} {
    %c0 = arith.constant 0 : index
    %c0_0 = arith.constant 0 : index
    %0 = vector.load %arg1[%c0, %c0_0] : memref<16x128xf32, #tpu.memory_space<vmem>>, vector<16x128xf32>
    %1 = arith.truncf %0 : vector<16x128xf32> to vector<16x128xbf16>
    %c0_1 = arith.constant 0 : index
    %c0_2 = arith.constant 0 : index
    %2 = vector.load %arg2[%c0_1, %c0_2] : memref<128x128xbf16, #tpu.memory_space<vmem>>, vector<128x128xbf16>
    %cst = arith.constant dense<0.000000e+00> : vector<16x128xf32>
    %3 = tpu.matmul %1, %2, %cst {dimension_numbers = #tpu.dot_dimension_numbers<[1], [0], [0], [1], [0, 0, 1, 1], [], []>} : vector<16x128xbf16>, vector<128x128xbf16>, vector<16x128xf32> -> vector<16x128xf32>
    %c0_3 = arith.constant 0 : index
    %c0_4 = arith.constant 0 : index
    %4 = vector.load %arg3[%c0_3, %c0_4] : memref<1x128xf32, #tpu.memory_space<vmem>>, vector<1x128xf32>
    %5 = vector.broadcast %4 : vector<1x128xf32> to vector<16x128xf32>
    %6 = arith.addf %3, %5 : vector<16x128xf32>
    %cst_5 = arith.constant 0.000000e+00 : f32
    %7 = vector.broadcast %cst_5 : f32 to vector<16x128xf32>
    %8 = arith.maximumf %6, %7 : vector<16x128xf32>
    %9 = arith.truncf %8 : vector<16x128xf32> to vector<16x128xbf16>
    %c0_6 = arith.constant 0 : index
    %c0_7 = arith.constant 0 : index
    %10 = vector.load %arg4[%c0_6, %c0_7] : memref<128x128xbf16, #tpu.memory_space<vmem>>, vector<128x128xbf16>
    %cst_8 = arith.constant dense<0.000000e+00> : vector<16x128xf32>
    %11 = tpu.matmul %9, %10, %cst_8 {dimension_numbers = #tpu.dot_dimension_numbers<[1], [0], [0], [1], [0, 0, 1, 1], [], []>} : vector<16x128xbf16>, vector<128x128xbf16>, vector<16x128xf32> -> vector<16x128xf32>
    %c0_9 = arith.constant 0 : index
    %c0_10 = arith.constant 0 : index
    %12 = vector.load %arg5[%c0_9, %c0_10] : memref<1x128xf32, #tpu.memory_space<vmem>>, vector<1x128xf32>
    %13 = vector.broadcast %12 : vector<1x128xf32> to vector<16x128xf32>
    %14 = arith.addf %11, %13 : vector<16x128xf32>
    %c0_11 = arith.constant 0 : index
    %c0_12 = arith.constant 0 : index
    %15 = vector.load %arg6[%c0_11, %c0_12] : memref<16x128xf32, #tpu.memory_space<vmem>>, vector<16x128xf32>
    tpu.vector_store %arg6[%c0_11, %c0_12], %14 {strides = array<i32>} : memref<16x128xf32, #tpu.memory_space<vmem>>, vector<16x128xf32>,
    return
  }
  func.func @transform_0(%arg0: i32) -> (i32, i32) {
    %c0_i32 = arith.constant 0 : i32
    %c0_i32_0 = arith.constant 0 : i32
    return %arg0, %c0_i32 : i32, i32
  }
  func.func @transform_1(%arg0: i32) -> (i32, i32) {
    %c0_i32 = arith.constant 0 : i32
    %c0_i32_0 = arith.constant 0 : i32
    %c0_i32_1 = arith.constant 0 : i32
    return %c0_i32, %c0_i32_0 : i32, i32
  }
  func.func @transform_2(%arg0: i32) -> (i32, i32) {
    %c0_i32 = arith.constant 0 : i32
    %c0_i32_0 = arith.constant 0 : i32
    %c0_i32_1 = arith.constant 0 : i32
    return %c0_i32, %c0_i32_0 : i32, i32
  }
  func.func @transform_3(%arg0: i32) -> (i32, i32) {
    %c0_i32 = arith.constant 0 : i32
    %c0_i32_0 = arith.constant 0 : i32
    %c0_i32_1 = arith.constant 0 : i32
    return %c0_i32, %c0_i32_0 : i32, i32
  }
  func.func @transform_4(%arg0: i32) -> (i32, i32) {
    %c0_i32 = arith.constant 0 : i32
    %c0_i32_0 = arith.constant 0 : i32
    %c0_i32_1 = arith.constant 0 : i32
    return %c0_i32, %c0_i32_0 : i32, i32
  }
  func.func @transform_5(%arg0: i32) -> (i32, i32) {
    %c0_i32 = arith.constant 0 : i32
    %c0_i32_0 = arith.constant 0 : i32
    return %arg0, %c0_i32 : i32, i32
  }
}

</mosaic_0001>

<bundles_post_ra>
// kernel: projection_head.1
= control target key start
LH: loop header
LB: loop body
LE: loop exit
PB: predicated region body
PF: predicated region fallthrough
CT: control target
= control target key end

     0   :  { %10 = vsyncpa [#allocation3], 0  ;;  %s511_s0 = inlined_call_operand.vmem [shape: f32[16,128], index: 0, kind: input, shape index: {}]   ;;  %s512_s1 = inlined_call_operand.hbm [shape: bf16[128,128], index: 1, kind: input, shape index: {}]   ;;  %s513_s2 = inlined_call_operand.vmem [shape: f32[1,128], index: 2, kind: input, shape index: {}]   ;;  %s514_s3 = inlined_call_operand.hbm [shape: bf16[128,128], index: 3, kind: input, shape index: {}]   ;;  %s515_s4 = inlined_call_operand.vmem [shape: f32[1,128], index: 4, kind: input, shape index: {}]   ;;  %s516_s5 = inlined_call_operand.vmem [shape: f32[16,128], index: 5, kind: output, shape index: {}]  }
   0x1   :  { %11 = vsyncpa [#allocation5], 0  ;;  %s433_s18 = smov [#allocation2]   ;;  %s385_s22 = scalar_lea.hbm %s512_s1, 1024 }
   0x2   :  { %s19_s19 = sshll.u32 %s433_s18, 4  ;;  %p386_p0 = scmp.ne.s32.totalorder %s512_s1, %s385_s22  ;;  %s20_s19 = int_to_ptr.vmem [resolvable:$true] %s19_s19 }
   0x3   :  { %p389_p1 = scmp.lt.u32.totalorder %s385_s22, %s512_s1 }
   0x5   :  { %p391_p2 = pnand %p389_p1, %p386_p0 }
   0x7   :  { %394 = shalt.err (!%p391_p2)
}
   0x8   :  { %s395_s27 = scalar_lea.vmem %s20_s19, 1024  ;;  %p400_p4 = scmp.lt.s32.totalorder %s20_s19, %s20_s19 }
   0x9   :  { %p396_p3 = scmp.ne.s32.totalorder %s20_s19, %s395_s27  ;;  %p401_p5 = scmp.lt.s32.totalorder %s395_s27, %s395_s27 }
   0xb   :  { %p402_p6 = por %p401_p5, %p400_p4 }
   0xd   :  { %p403_p7 = pnand %p402_p6, %p396_p3 }
   0xf   :  { %406 = shalt.err (!%p403_p7)
}
  0x10   :  { %s434_s28 = smov 64   ;;  %s435_s29 = smov 4  }
  0x11   :  { %25 = dma.hbm_to_vmem [thread:$0]  %s512_s1, 1024, %s20_s19, [#allocation3], %s434_s28, %s434_s28, %s435_s29  }
  0x12   :  { %s436_s7 = smov [#allocation4]   ;;  %s407_s11 = scalar_lea.hbm %s514_s3, 1024 }
  0x13   :  { %s33_s8 = sshll.u32 %s436_s7, 4  ;;  %p408_p8 = scmp.ne.s32.totalorder %s514_s3, %s407_s11  ;;  %s34_s8 = int_to_ptr.vmem [resolvable:$true] %s33_s8 }
  0x14   :  { %p411_p9 = scmp.lt.u32.totalorder %s407_s11, %s514_s3 }
  0x16   :  { %p413_p10 = pnand %p411_p9, %p408_p8 }
  0x18   :  { %416 = shalt.err (!%p413_p10)
}
  0x19   :  { %s417_s16 = scalar_lea.vmem %s34_s8, 1024  ;;  %p422_p12 = scmp.lt.s32.totalorder %s34_s8, %s34_s8 }
  0x1a   :  { %p418_p11 = scmp.ne.s32.totalorder %s34_s8, %s417_s16  ;;  %p423_p13 = scmp.lt.s32.totalorder %s417_s16, %s417_s16 }
  0x1c   :  { %p424_p0 = por %p423_p13, %p422_p12 }
  0x1e   :  { %p425_p1 = pnand %p424_p0, %p418_p11 }
  0x20   :  { %428 = shalt.err (!%p425_p1)
}
  0x21   :  { %39 = dma.hbm_to_vmem [thread:$0]  %s514_s3, 1024, %s34_s8, [#allocation5], %s434_s28, %s434_s28, %s435_s29  }
  0x22   :  { %429 = dma.done.wait [#allocation3], 1024  }
  0x23   :  { %430 = vsyncadd [#allocation3], 4294966272 }
  0x24   :  { %431 = dma.done.wait [#allocation5], 1024  }
  0x25   :  { %432 = vsyncadd [#allocation5], 4294966272  ;;  %v437_v0 = vmov 0.0   ;;  %vm438_vm0 = vmmov 0   ;;  %v369_v1 = vld [vmem:[#allocation2] sm:$0xff]   ;;  %v370_v2 = vld [vmem:[#allocation2 + $0x8] sm:$0xff]  }
  0x26   :  { %323 = vmatprep.subr.bf16.mxu0 %v437_v0  ;;  %339 = vmatprep.mubr.msk.bf16.mxu0 %vm438_vm0, %v437_v0  ;;  %v371_v3 = vld [vmem:[#allocation2 + $0x10] sm:$0xff]   ;;  %v377_v4 = vld [vmem:[#allocation4] sm:$0xff]   ;;  %v372_v5 = vld [vmem:[#allocation2 + $0x18] sm:$0xff]  }
  0x27   :  { %343 = vmatprep.subr.bf16.mxu1 %v437_v0  ;;  %359 = vmatprep.mubr.msk.bf16.mxu1 %vm438_vm0, %v437_v0  ;;  %v378_v6 = vld [vmem:[#allocation4 + $0x8] sm:$0xff]   ;;  %v373_v7 = vld [vmem:[#allocation2 + $0x20] sm:$0xff]   ;;  %v379_v8 = vld [vmem:[#allocation4 + $0x10] sm:$0xff]  }
  0x28   :  { %324 = vmatpush3.bf16.msra.mxu0 %v369_v1  ;;  %344 = vmatpush3.bf16.msra.mxu1 %v377_v4  ;;  %v374_v9 = vld [vmem:[#allocation2 + $0x28] sm:$0xff]   ;;  %v380_v10 = vld [vmem:[#allocation4 + $0x18] sm:$0xff]   ;;  %v375_v11 = vld [vmem:[#allocation2 + $0x30] sm:$0xff]  }
  0x29   :  { %325 = vmatprep.subr.bf16.mxu0 %v437_v0  ;;  %345 = vmatprep.subr.bf16.mxu1 %v437_v0  ;;  %v381_v12 = vld [vmem:[#allocation4 + $0x20] sm:$0xff]   ;;  %v376_v13 = vld [vmem:[#allocation2 + $0x38] sm:$0xff]   ;;  %v50_v15 = vld [vmem:[%s511_s0 + $0x8] sm:$0xff] }
  0x2a   :  { %v49_v14 = vld [vmem:[%s511_s0] sm:$0xff]  ;;  %v382_v16 = vld [vmem:[#allocation4 + $0x28] sm:$0xff]   ;;  %v383_v18 = vld [vmem:[#allocation4 + $0x30] sm:$0xff]  }
  0x2b   :  { %v51_v17 = vpack.c.bf16 %v50_v15, %v49_v14  ;;  %v384_v19 = vld [vmem:[#allocation4 + $0x38] sm:$0xff]   ;;  %v287_v20 = vld [vmem:[%s513_s2] ss:$0 sm:$0xff] }
  0x2c   :  { %326 = vmatpush3.bf16.msra.mxu0 %v370_v2  ;;  %346 = vmatpush3.bf16.msra.mxu1 %v378_v6  ;;  %v296_v30 = vld [vmem:[%s515_s4] ss:$0 sm:$0xff] }
  0x2d   :  { %327 = vmatprep.subr.bf16.mxu0 %v437_v0  ;;  %347 = vmatprep.subr.bf16.mxu1 %v437_v0 }
  0x30   :  { %328 = vmatpush3.bf16.msra.mxu0 %v371_v3  ;;  %348 = vmatpush3.bf16.msra.mxu1 %v379_v8 }
  0x31   :  { %329 = vmatprep.subr.bf16.mxu0 %v437_v0  ;;  %349 = vmatprep.subr.bf16.mxu1 %v437_v0 }
  0x34   :  { %330 = vmatpush3.bf16.msra.mxu0 %v372_v5  ;;  %350 = vmatpush3.bf16.msra.mxu1 %v380_v10 }
  0x35   :  { %331 = vmatprep.subr.bf16.mxu0 %v437_v0  ;;  %351 = vmatprep.subr.bf16.mxu1 %v437_v0 }
  0x38   :  { %332 = vmatpush3.bf16.msra.mxu0 %v373_v7  ;;  %352 = vmatpush3.bf16.msra.mxu1 %v381_v12 }
  0x39   :  { %333 = vmatprep.subr.bf16.mxu0 %v437_v0  ;;  %353 = vmatprep.subr.bf16.mxu1 %v437_v0 }
  0x3c   :  { %334 = vmatpush3.bf16.msra.mxu0 %v374_v9  ;;  %354 = vmatpush3.bf16.msra.mxu1 %v382_v16 }
  0x3d   :  { %335 = vmatprep.subr.bf16.mxu0 %v437_v0  ;;  %355 = vmatprep.subr.bf16.mxu1 %v437_v0 }
  0x40   :  { %336 = vmatpush3.bf16.msra.mxu0 %v375_v11  ;;  %356 = vmatpush3.bf16.msra.mxu1 %v383_v18 }
  0x41   :  { %337 = vmatprep.subr.bf16.mxu0 %v437_v0  ;;  %357 = vmatprep.subr.bf16.mxu1 %v437_v0 }
  0x44   :  { %338 = vmatpush3.bf16.msra.mxu0 %v376_v13  ;;  %358 = vmatpush3.bf16.msra.mxu1 %v384_v19 }
  0x47   :  { %340 = vmatmul.mubr.bf16.vlgmr.msra.gmra.mrb[0].mxu0 %v51_v17 }
 0x11a   :  { %v157_v21 = vpop.f32.mrb[0].mxu0 }
 0x11b   :  { %v158_v22 = vadd.f32 %v287_v20, %v157_v21  ;;  %v341_v23 = vpop.f32.mrb[1].mxu0 }
 0x11c   :  { %v160_v24 = vpop.f32.mrb[2].mxu0 }
 0x11d   :  { %v161_v25 = vadd.f32 %v287_v20, %v160_v24  ;;  %v342_v26 = vpop.f32.mrb[3].mxu0  ;;  %v164_v27 = vmax.f32 %v158_v22, 0.0 }
 0x11f   :  { %v165_v28 = vmax.f32 %v161_v25, 0.0 }
 0x121   :  { %v166_v29 = vpack.c.bf16 %v165_v28, %v164_v27 }
 0x123   :  { %360 = vmatmul.mubr.bf16.vlgmr.msra.gmra.mrb[0].mxu1 %v166_v29 }
 0x1f6   :  { %v272_v31 = vpop.f32.mrb[0].mxu1 }
 0x1f7   :  { %v273_v32 = vadd.f32 %v296_v30, %v272_v31  ;;  %v361_v33 = vpop.f32.mrb[1].mxu1 }
 0x1f8   :  { %v275_v34 = vpop.f32.mrb[2].mxu1 }
 0x1f9   :  { %279 = vst [vmem:[%s516_s5] sm:$0xff] %v273_v32  ;;  %v276_v35 = vadd.f32 %v296_v30, %v275_v34  ;;  %v362_v36 = vpop.f32.mrb[3].mxu1 }
 0x1fb   :  { %280 = vst [vmem:[%s516_s5 + $0x8] sm:$0xff] %v276_v35 }
 0x1fc   :  { %285 = vsyncpa [#allocation3], 1 }
 0x1fd   :  { %286 = vsyncpa [#allocation5], 1 }

</bundles_post_ra>
